<compile_context>
chip_gen: v7x
topology: tpu7x:2x2x1
jax: 0.10.0
libtpu: 0.0.40
codegen_flags: <defaults>
</compile_context>

<pallas_src>
import functools

import jax
import jax.numpy as jnp
from jax import lax
from jax.experimental import pallas as pl
from jax.experimental.pallas import tpu as pltpu

_LANES = 128
_SUBLANES = 8


def _round_up(x, m):
    return ((x + m - 1) // m) * m


def _chip_tuning():
    """Return (target_block_bytes, vmem_limit_bytes, is_v7) for this chip."""
    try:
        kind = jax.devices()[0].device_kind.lower()
    except Exception:  # pragma: no cover - no accelerator visible
        kind = ""
    if "v7" in kind:
        # 3 inputs x 2 pipeline buffers x 8 MiB = 48 MiB, fits in 56 MiB
        # scoped VMEM on v7x's 64 MiB physical VMEM.
        return 8 * 1024 * 1024, 56 * 1024 * 1024, True
    if "v6" in kind:
        # 3 x 2 x 4 MiB = 24 MiB, under an explicit 28 MiB limit.
        return 4 * 1024 * 1024, 28 * 1024 * 1024, False
    # v5e (and anything unknown): 3 x 2 x 2 MiB = 12 MiB fits the 16 MiB
    # default scoped-VMEM limit, and per-step HBM time already dwarfs the
    # ~0.35us grid-step overhead at ~820 GB/s.
    return 2 * 1024 * 1024, None, False


def _loss_partials_kernel(f_ref, fd_ref, m_ref, num_ref, den_ref, *,
                          blocks_per_split, rows, first_masked_block,
                          total_grid_blocks):
    """Accumulate per-(split, batch) partial numerator / denominator sums.

    f_ref/fd_ref/m_ref : (tile_rows, 128) native-dtype input blocks.
    num_ref/den_ref    : (8, 128) f32 output blocks, resident across the
                         reduction axis (out index_map is constant in k).
    """
    s = pl.program_id(0)          # reduction split
    k = pl.program_id(2)          # reduction block within the split
    g = s * blocks_per_split + k  # global reduction-block index
    tile_rows = f_ref.shape[0]

    @pl.when(k == 0)
    def _():
        num_ref[...] = jnp.zeros_like(num_ref)
        den_ref[...] = jnp.zeros_like(den_ref)

    def _accum(masked):
        # Native-dtype blocks -> f32, folded to (n, 8, 128): the reshape keeps
        # every (8, 128) tile intact, so it's pure vreg re-indexing.
        f = f_ref[...].astype(jnp.float32).reshape(-1, _SUBLANES, _LANES)
        fd = fd_ref[...].astype(jnp.float32).reshape(-1, _SUBLANES, _LANES)
        m = m_ref[...].astype(jnp.float32).reshape(-1, _SUBLANES, _LANES)
        num_t = m * jnp.abs(f - fd)
        den_t = m
        if masked:
            # Zero out rows past the true row count (the OOB region of a
            # partial block is undefined garbage; also covers fully-dummy
            # blocks introduced by the reduction split).  Use where-select,
            # not multiply-by-zero, so garbage NaN/Inf cannot leak through.
            local_row = (
                lax.broadcasted_iota(jnp.int32, f.shape, 0) * _SUBLANES
                + lax.broadcasted_iota(jnp.int32, f.shape, 1))
            keep = (g * tile_rows + local_row) < rows
            num_t = jnp.where(keep, num_t, 0.0)
            den_t = jnp.where(keep, den_t, 0.0)
        # Pure VPU: whole-vreg adds into the resident (8, 128) accumulators.
        num_ref[...] += jnp.sum(num_t, axis=0)
        den_ref[...] += jnp.sum(den_t, axis=0)

    if first_masked_block >= total_grid_blocks:
        _accum(False)                       # no ragged tail, no dummy blocks
    elif first_masked_block == 0:
        _accum(True)
    else:
        @pl.when(g < first_masked_block)    # steady state: mask-free
        def _():
            _accum(False)

        @pl.when(g >= first_masked_block)   # tail / dummy blocks
        def _():
            _accum(True)


def sparse_masked_l1_loss(flows, flows_from_depth, sparse_masks, epsilon=1.0,
                          target_block_bytes=None, num_splits=None,
                          vmem_limit_bytes=None):
    """flows, flows_from_depth, sparse_masks: (B, C, H, W) -> (B,) float32."""
    if flows.shape != flows_from_depth.shape or flows.shape != sparse_masks.shape:
        raise ValueError("all three inputs must share the same shape")

    B = flows.shape[0]
    N = 1
    for d in flows.shape[1:]:
        N *= d

    auto_block, auto_vmem, is_v7 = _chip_tuning()
    if target_block_bytes is None:
        target_block_bytes = auto_block
    if vmem_limit_bytes is None:
        vmem_limit_bytes = auto_vmem

    itemsizes = [jnp.dtype(a.dtype).itemsize
                 for a in (flows, flows_from_depth, sparse_masks)]
    max_item = max(itemsizes)
    # Dtype-aware sublane multiple: 8 for f32, 16 for bf16, 32 for int8/fp8,
    # so native-dtype blocks stay sublane-packed.
    sub_mult = max(_SUBLANES, 32 // min(itemsizes))

    # Lane-dense layout (B, rows, 128).  Free reshape when N is a multiple of
    # 128 and spans at least one sublane group; otherwise (uncommon) pad the
    # flattened tail with zeros (zero mask => contributes to neither sum).
    if N % _LANES == 0 and (N // _LANES) >= sub_mult:
        rows = N // _LANES
        pad = 0
    else:
        rows = _round_up(max(pl.cdiv(N, _LANES), sub_mult), sub_mult)
        pad = rows * _LANES - N

    def _prep(x):
        if pad:
            x = jnp.pad(x.reshape(B, N), ((0, 0), (0, pad)))
        return x.reshape(B, rows, _LANES)

    f = _prep(flows)
    fd = _prep(flows_from_depth)
    m = _prep(sparse_masks)

    # Reduction tile over rows: ~target_block_bytes per input block, a
    # multiple of sub_mult, never larger than the row count (the ragged last
    # block is handled in-kernel, so no wrapper padding is needed here).
    target_rows = max(sub_mult,
                      (target_block_bytes // (_LANES * max_item))
                      // sub_mult * sub_mult)
    tile_rows = min(target_rows, (rows // sub_mult) * sub_mult)
    num_k = pl.cdiv(rows, tile_rows)

    # Optional split of the reduction axis so both v7x TensorCores stay busy
    # when the batch alone can't fill them.  Harmless (just a tiny wrapper
    # combine) on single-core chips.
    if num_splits is None:
        num_splits = 2 if (is_v7 and B < 4 and num_k >= 2) else 1
    num_splits = max(1, min(int(num_splits), num_k))
    blocks_per_split = pl.cdiv(num_k, num_splits)
    total_grid_blocks = num_splits * blocks_per_split
    first_masked_block = num_k - 1 if rows % tile_rows else num_k

    if total_grid_blocks > num_k:
        # Last split has dummy iterations: clamp the block index so the DMA
        # stays in bounds; the kernel fully masks those blocks to zero.
        def _block_idx(s, k):
            return jnp.minimum(s * blocks_per_split + k, num_k - 1)
    else:
        def _block_idx(s, k):
            return s * blocks_per_split + k

    in_spec = pl.BlockSpec((None, tile_rows, _LANES),
                           lambda s, b, k: (b, _block_idx(s, k), 0))
    out_spec = pl.BlockSpec((None, None, _SUBLANES, _LANES),
                            lambda s, b, k: (s, b, 0, 0))
    out_struct = jax.ShapeDtypeStruct(
        (num_splits, B, _SUBLANES, _LANES), jnp.float32)

    kernel = functools.partial(
        _loss_partials_kernel,
        blocks_per_split=blocks_per_split,
        rows=rows,
        first_masked_block=first_masked_block,
        total_grid_blocks=total_grid_blocks)

    in_bytes = sum(int(x.size) * jnp.dtype(x.dtype).itemsize
                   for x in (f, fd, m))
    out_bytes = 2 * num_splits * B * _SUBLANES * _LANES * 4

    partial_num, partial_den = pl.pallas_call(
        kernel,
        out_shape=(out_struct, out_struct),
        grid_spec=pltpu.PrefetchScalarGridSpec(
            num_scalar_prefetch=0,
            grid=(num_splits, B, blocks_per_split),
            in_specs=[in_spec, in_spec, in_spec],
            out_specs=(out_spec, out_spec),
        ),
        compiler_params=pltpu.CompilerParams(
            dimension_semantics=("parallel", "parallel", "arbitrary"),
            vmem_limit_bytes=vmem_limit_bytes),
        cost_estimate=pl.CostEstimate(
            flops=5 * B * rows * _LANES,
            transcendentals=0,
            bytes_accessed=in_bytes + out_bytes),
    )(f, fd, m)

    # Tiny wrapper-side combine: cross-lane/split reduction + epsilon divide
    # (keeps epsilon out of the kernel -> no recompile per epsilon value).
    num = jnp.sum(partial_num, axis=(0, 2, 3))
    den = jnp.sum(partial_den, axis=(0, 2, 3))
    return num / (jnp.asarray(epsilon, jnp.float32) + den)


def _reference(flows, flows_from_depth, sparse_masks, epsilon=1.0):
    f = flows.astype(jnp.float32)
    fd = flows_from_depth.astype(jnp.float32)
    m = sparse_masks.astype(jnp.float32)
    num = jnp.sum(m * jnp.abs(f - fd), axis=(1, 2, 3))
    den = epsilon + jnp.sum(m, axis=(1, 2, 3))
    return num / den


if __name__ == "__main__":
    root = jax.random.PRNGKey(0)

    def _make_inputs(key, shape, dtype=jnp.float32):
        k1, k2, k3 = jax.random.split(key, 3)
        flows = jax.random.normal(k1, shape).astype(dtype)
        flows_from_depth = jax.random.normal(k2, shape).astype(dtype)
        sparse_masks = (jax.random.uniform(k3, shape) > 0.5).astype(jnp.float32)
        return flows, flows_from_depth, sparse_masks

    # 1) Primary case: batch=2, channels=4, spatial=16 (N % 128 == 0, no pad).
    f1, fd1, m1 = _make_inputs(jax.random.fold_in(root, 1), (2, 4, 16, 16))
    loss1 = sparse_masked_l1_loss(f1, fd1, m1, epsilon=1.0)
    jax.block_until_ready(loss1)
    ref1 = _reference(f1, fd1, m1, epsilon=1.0)
    assert loss1.shape == (2,)
    assert jnp.allclose(loss1, ref1, rtol=1e-5, atol=1e-5), (loss1, ref1)

    # 2) Ragged tail + forced reduction split (exercises in-kernel masking,
    #    the clamped dummy block, and the wrapper combine): rows=17, tile=8.
    f2, fd2, m2 = _make_inputs(jax.random.fold_in(root, 2), (1, 2, 16, 68))
    loss2 = sparse_masked_l1_loss(
        f2, fd2, m2, epsilon=1.0,
        target_block_bytes=8 * _LANES * 4, num_splits=2)
    jax.block_until_ready(loss2)
    ref2 = _reference(f2, fd2, m2, epsilon=1.0)
    assert jnp.allclose(loss2, ref2, rtol=1e-5, atol=1e-5), (loss2, ref2)

    # 3) N not a multiple of 128 -> zero-pad fallback path.
    f3, fd3, m3 = _make_inputs(jax.random.fold_in(root, 3), (2, 3, 5, 7))
    loss3 = sparse_masked_l1_loss(f3, fd3, m3, epsilon=1.0)
    jax.block_until_ready(loss3)
    ref3 = _reference(f3, fd3, m3, epsilon=1.0)
    assert jnp.allclose(loss3, ref3, rtol=1e-5, atol=1e-5), (loss3, ref3)

    # 4) bf16 flows with f32 mask (exercises in-kernel upcast + dtype-aware
    #    sublane rounding).
    f4, fd4, m4 = _make_inputs(jax.random.fold_in(root, 4), (2, 2, 32, 32),
                               dtype=jnp.bfloat16)
    loss4 = sparse_masked_l1_loss(f4, fd4, m4, epsilon=1.0)
    jax.block_until_ready(loss4)
    ref4 = _reference(f4, fd4, m4, epsilon=1.0)
    assert jnp.allclose(loss4, ref4, rtol=1e-3, atol=1e-3), (loss4, ref4)

    print("KERNEL_OK")
</pallas_src>

<mosaic_0001>
module attributes {stable_mosaic.version = 11 : i64} {
  func.func @_loss_partials_kernel(%arg0: i32, %arg1: i32, %arg2: i32, %arg3: memref<1x8x128xf32, #tpu.memory_space<vmem>>, %arg4: memref<1x8x128xf32, #tpu.memory_space<vmem>>, %arg5: memref<1x8x128xf32, #tpu.memory_space<vmem>>, %arg6: memref<1x1x8x128xf32, #tpu.memory_space<vmem>>, %arg7: memref<1x1x8x128xf32, #tpu.memory_space<vmem>>) attributes {dimension_semantics = [#tpu.dimension_semantics<parallel>, #tpu.dimension_semantics<parallel>, #tpu.dimension_semantics<arbitrary>], iteration_bounds = array<i64: 1, 2, 1>, scalar_prefetch = 0 : i64, scratch_operands = 0 : i64, tpu.core_type = #tpu.core_type<tc>, window_params = [{transform_indices = @transform_0, window_bounds = array<i64: 1, 8, 128>}, {transform_indices = @transform_1, window_bounds = array<i64: 1, 8, 128>}, {transform_indices = @transform_2, window_bounds = array<i64: 1, 8, 128>}, {transform_indices = @transform_3, window_bounds = array<i64: 1, 1, 8, 128>}, {transform_indices = @transform_4, window_bounds = array<i64: 1, 1, 8, 128>}]} {
    %c0_i32 = arith.constant 0 : i32
    %0 = arith.cmpi eq, %arg2, %c0_i32 : i32
    %1 = arith.extui %0 : i1 to i32
    %c0_i32_0 = arith.constant 0 : i32
    %2 = arith.cmpi ne, %1, %c0_i32_0 : i32
    scf.if %2 {
      %cst_26 = arith.constant 0.000000e+00 : f32
      %29 = vector.broadcast %cst_26 : f32 to vector<8x128xf32>
      %c0_27 = arith.constant 0 : index
      %c0_28 = arith.constant 0 : index
      %c0_29 = arith.constant 0 : index
      %c0_30 = arith.constant 0 : index
      %30 = vector.load %arg6[%c0_27, %c0_28, %c0_29, %c0_30] : memref<1x1x8x128xf32, #tpu.memory_space<vmem>>, vector<1x1x8x128xf32>
      %31 = vector.shape_cast %30 : vector<1x1x8x128xf32> to vector<8x128xf32>
      %32 = vector.shape_cast %29 : vector<8x128xf32> to vector<1x1x8x128xf32>
      tpu.vector_store %arg6[%c0_27, %c0_28, %c0_29, %c0_30], %32 {strides = array<i32>} : memref<1x1x8x128xf32, #tpu.memory_space<vmem>>, vector<1x1x8x128xf32>,
      %cst_31 = arith.constant 0.000000e+00 : f32
      %33 = vector.broadcast %cst_31 : f32 to vector<8x128xf32>
      %c0_32 = arith.constant 0 : index
      %c0_33 = arith.constant 0 : index
      %c0_34 = arith.constant 0 : index
      %c0_35 = arith.constant 0 : index
      %34 = vector.load %arg7[%c0_32, %c0_33, %c0_34, %c0_35] : memref<1x1x8x128xf32, #tpu.memory_space<vmem>>, vector<1x1x8x128xf32>
      %35 = vector.shape_cast %34 : vector<1x1x8x128xf32> to vector<8x128xf32>
      %36 = vector.shape_cast %33 : vector<8x128xf32> to vector<1x1x8x128xf32>
      tpu.vector_store %arg7[%c0_32, %c0_33, %c0_34, %c0_35], %36 {strides = array<i32>} : memref<1x1x8x128xf32, #tpu.memory_space<vmem>>, vector<1x1x8x128xf32>,
    } else {
    }
    %c0 = arith.constant 0 : index
    %c0_1 = arith.constant 0 : index
    %c0_2 = arith.constant 0 : index
    %3 = vector.load %arg3[%c0, %c0_1, %c0_2] : memref<1x8x128xf32, #tpu.memory_space<vmem>>, vector<1x8x128xf32>
    %4 = vector.shape_cast %3 : vector<1x8x128xf32> to vector<8x128xf32>
    %5 = vector.shape_cast %4 : vector<8x128xf32> to vector<1x8x128xf32>
    %c0_3 = arith.constant 0 : index
    %c0_4 = arith.constant 0 : index
    %c0_5 = arith.constant 0 : index
    %6 = vector.load %arg4[%c0_3, %c0_4, %c0_5] : memref<1x8x128xf32, #tpu.memory_space<vmem>>, vector<1x8x128xf32>
    %7 = vector.shape_cast %6 : vector<1x8x128xf32> to vector<8x128xf32>
    %8 = vector.shape_cast %7 : vector<8x128xf32> to vector<1x8x128xf32>
    %c0_6 = arith.constant 0 : index
    %c0_7 = arith.constant 0 : index
    %c0_8 = arith.constant 0 : index
    %9 = vector.load %arg5[%c0_6, %c0_7, %c0_8] : memref<1x8x128xf32, #tpu.memory_space<vmem>>, vector<1x8x128xf32>
    %10 = vector.shape_cast %9 : vector<1x8x128xf32> to vector<8x128xf32>
    %11 = vector.shape_cast %10 : vector<8x128xf32> to vector<1x8x128xf32>
    %12 = arith.subf %5, %8 : vector<1x8x128xf32>
    %13 = math.absf %12 : vector<1x8x128xf32>
    %14 = arith.mulf %11, %13 : vector<1x8x128xf32>
    %c0_9 = arith.constant 0 : index
    %c0_10 = arith.constant 0 : index
    %c0_11 = arith.constant 0 : index
    %c0_12 = arith.constant 0 : index
    %15 = vector.load %arg6[%c0_9, %c0_10, %c0_11, %c0_12] : memref<1x1x8x128xf32, #tpu.memory_space<vmem>>, vector<1x1x8x128xf32>
    %16 = vector.shape_cast %15 : vector<1x1x8x128xf32> to vector<8x128xf32>
    %cst = arith.constant dense<0.000000e+00> : vector<8x128xf32>
    %17 = vector.multi_reduction <add>, %14, %cst [0] : vector<1x8x128xf32> to vector<8x128xf32>
    %18 = arith.addf %16, %17 : vector<8x128xf32>
    %c0_13 = arith.constant 0 : index
    %c0_14 = arith.constant 0 : index
    %c0_15 = arith.constant 0 : index
    %c0_16 = arith.constant 0 : index
    %19 = vector.load %arg6[%c0_13, %c0_14, %c0_15, %c0_16] : memref<1x1x8x128xf32, #tpu.memory_space<vmem>>, vector<1x1x8x128xf32>
    %20 = vector.shape_cast %19 : vector<1x1x8x128xf32> to vector<8x128xf32>
    %21 = vector.shape_cast %18 : vector<8x128xf32> to vector<1x1x8x128xf32>
    tpu.vector_store %arg6[%c0_13, %c0_14, %c0_15, %c0_16], %21 {strides = array<i32>} : memref<1x1x8x128xf32, #tpu.memory_space<vmem>>, vector<1x1x8x128xf32>,
    %c0_17 = arith.constant 0 : index
    %c0_18 = arith.constant 0 : index
    %c0_19 = arith.constant 0 : index
    %c0_20 = arith.constant 0 : index
    %22 = vector.load %arg7[%c0_17, %c0_18, %c0_19, %c0_20] : memref<1x1x8x128xf32, #tpu.memory_space<vmem>>, vector<1x1x8x128xf32>
    %23 = vector.shape_cast %22 : vector<1x1x8x128xf32> to vector<8x128xf32>
    %cst_21 = arith.constant dense<0.000000e+00> : vector<8x128xf32>
    %24 = vector.multi_reduction <add>, %11, %cst_21 [0] : vector<1x8x128xf32> to vector<8x128xf32>
    %25 = arith.addf %23, %24 : vector<8x128xf32>
    %c0_22 = arith.constant 0 : index
    %c0_23 = arith.constant 0 : index
    %c0_24 = arith.constant 0 : index
    %c0_25 = arith.constant 0 : index
    %26 = vector.load %arg7[%c0_22, %c0_23, %c0_24, %c0_25] : memref<1x1x8x128xf32, #tpu.memory_space<vmem>>, vector<1x1x8x128xf32>
    %27 = vector.shape_cast %26 : vector<1x1x8x128xf32> to vector<8x128xf32>
    %28 = vector.shape_cast %25 : vector<8x128xf32> to vector<1x1x8x128xf32>
    tpu.vector_store %arg7[%c0_22, %c0_23, %c0_24, %c0_25], %28 {strides = array<i32>} : memref<1x1x8x128xf32, #tpu.memory_space<vmem>>, vector<1x1x8x128xf32>,
    return
  }
  func.func @transform_0(%arg0: i32, %arg1: i32, %arg2: i32) -> (i32, i32, i32) {
    %c1_i32 = arith.constant 1 : i32
    %0 = arith.muli %arg0, %c1_i32 : i32
    %1 = arith.addi %0, %arg2 : i32
    %c0_i32 = arith.constant 0 : i32
    %c0_i32_0 = arith.constant 0 : i32
    return %arg1, %1, %c0_i32 : i32, i32, i32
  }
  func.func @transform_1(%arg0: i32, %arg1: i32, %arg2: i32) -> (i32, i32, i32) {
    %c1_i32 = arith.constant 1 : i32
    %0 = arith.muli %arg0, %c1_i32 : i32
    %1 = arith.addi %0, %arg2 : i32
    %c0_i32 = arith.constant 0 : i32
    %c0_i32_0 = arith.constant 0 : i32
    return %arg1, %1, %c0_i32 : i32, i32, i32
  }
  func.func @transform_2(%arg0: i32, %arg1: i32, %arg2: i32) -> (i32, i32, i32) {
    %c1_i32 = arith.constant 1 : i32
    %0 = arith.muli %arg0, %c1_i32 : i32
    %1 = arith.addi %0, %arg2 : i32
    %c0_i32 = arith.constant 0 : i32
    %c0_i32_0 = arith.constant 0 : i32
    return %arg1, %1, %c0_i32 : i32, i32, i32
  }
  func.func @transform_3(%arg0: i32, %arg1: i32, %arg2: i32) -> (i32, i32, i32, i32) {
    %c0_i32 = arith.constant 0 : i32
    %c0_i32_0 = arith.constant 0 : i32
    %c0_i32_1 = arith.constant 0 : i32
    return %arg0, %arg1, %c0_i32, %c0_i32_0 : i32, i32, i32, i32
  }
  func.func @transform_4(%arg0: i32, %arg1: i32, %arg2: i32) -> (i32, i32, i32, i32) {
    %c0_i32 = arith.constant 0 : i32
    %c0_i32_0 = arith.constant 0 : i32
    %c0_i32_1 = arith.constant 0 : i32
    return %arg0, %arg1, %c0_i32, %c0_i32_0 : i32, i32, i32, i32
  }
}

</mosaic_0001>

<bundles_post_ra>
// kernel: tpu_custom_call.1
= control target key start
LH: loop header
LB: loop body
LE: loop exit
PB: predicated region body
PF: predicated region fallthrough
CT: control target
= control target key end

     0   :  { %s1206_s0 = inlined_call_operand.hbm [shape: f32[2,8,128], index: 0, kind: input, shape index: {}]   ;;  %s1207_s1 = inlined_call_operand.hbm [shape: f32[2,8,128], index: 1, kind: input, shape index: {}]   ;;  %s1208_s2 = inlined_call_operand.hbm [shape: f32[2,8,128], index: 2, kind: input, shape index: {}]   ;;  %s1209_s3 = inlined_call_operand.hbm [shape: f32[1,2,8,128], index: 3, kind: output, shape index: {0}]   ;;  %s1210_s4 = inlined_call_operand.hbm [shape: f32[1,2,8,128], index: 4, kind: output, shape index: {1}]  }
   0x1   :  { %1219 = sst [smem:[#allocation19_spill]] %s1207_s1 }
   0x2   :  { %10 = vsyncpa [#allocation3], 0 }
   0x3   :  { %12 = vsyncpa [#allocation3 + $0x1], 0 }
   0x4   :  { %13 = vsyncpa [#allocation6], 0 }
   0x5   :  { %15 = vsyncpa [#allocation6 + $0x1], 0 }
   0x6   :  { %16 = vsyncpa [#allocation4], 0 }
   0x7   :  { %18 = vsyncpa [#allocation4 + $0x1], 0 }
   0x8   :  { %19 = vsyncpa [#allocation10], 0 }
   0x9   :  { %21 = vsyncpa [#allocation10 + $0x1], 0  ;;  %s901_s15 = smov 0   ;;  %s903_s16 = smov 0  }
   0xa   :  { %s905_s17 = smov 0   ;;  %s907_s18 = smov 0  }
   0xb   :  { %s909_s19 = smov 0   ;;  %s911_s20 = smov 0  }
   0xc LB: > { %1220 = sst [smem:[#allocation15_spill]] %s865_s19  ;;  %s932_s21 = sadd.s32 4294967295, %s869_s20   ;;  %s869_s20 = sphi %s911_s20, %s27_s20   ;;  %s865_s19 = sphi %s909_s19, %s1244_s19   ;;  %s861_s18 = sphi %s907_s18, %s1243_s18   ;;  %s857_s17 = sphi %s905_s17, %s1247_s17   ;;  %s853_s16 = sphi %s903_s16, %s1246_s16   ;;  %s849_s15 = sphi %s901_s15, %s1245_s15  }
   0xd   : > { %1221 = sst [smem:[#allocation16_spill]] %s869_s20  ;;  %s562_s22 = sadd.s32 4294967294, %s869_s20  }
   0xe   : > { %s42_s23 = sadd.s32 1, %s865_s19  ;;  %s57_s24 = sadd.s32 1, %s857_s17 }
   0xf   : > { %p44_p0 = scmp.ge.s32.totalorder %s42_s23, 2  ;;  %p64_p1 = scmp.ne.s32.totalorder %s857_s17, %s853_s16 }
  0x10   : > { %p65_p2 = scmp.eq.s32.totalorder %s869_s20, 0  ;;  %p70_p3 = scmp.ne.s32.totalorder %s853_s16, %s849_s15 }
  0x11   : > { %s1249_s23 = smov (%p44_p0, %s42_s23), 0  ;;  %p71_p5 = scmp.eq.s32.totalorder %s932_s21, 0 }
  0x12   : > { %1222 = sst [smem:[#allocation17_spill]] %s1249_s23  ;;  %p944_p4 = por %p65_p2, %p64_p1 }
  0x13   : > { %s52_s26 = ssub.s32 %s865_s19, %s1249_s23  ;;  %p156_p6 = scmp.eq.s32.totalorder %s932_s21, 1 }
  0x14   : > { %p55_p7 = scmp.eq.s32.totalorder %s52_s26, 0  ;;  %p952_p8 = por %p71_p5, %p70_p3 }
  0x15   : > { %p956_p9 = por %p156_p6, %p64_p1  ;;  %p162_p10 = scmp.eq.s32.totalorder %s562_s22, 1 }
  0x16   : > { %s1224_s27 = scalar_select %p952_p8, 1, 0 }
  0x17   : > { %s1225_s28 = scalar_select %p956_p9, 1, 0 }
  0x18   : > { %s961_s29 = scalar_select %p55_p7, %s857_s17, %s57_s24  }
  0x19   : > { %p963_p11 = por %p162_p10, %p70_p3  ;;  %p610_p13 = scmp.lt.s32.totalorder %s869_s20, 2 }
  0x1a   : > { %1226 = sst [smem:[#allocation18_spill]] %s961_s29  ;;  %s1211_s5 = sand.u32 1, %s857_s17  }
  0x1b   : > { %s1227_s30 = scalar_select %p963_p11, 1, 0 }
  0x1c   : > { %s972_s6 = sshll.u32 %s1211_s5, 3  ;;  %s975_s7 = sshll.u32 %s865_s19, 7 }
  0x1d   : > { %p979_p0 = pnand %p610_p13, %p944_p4  ;;  %s230_s9 = sand.u32 1, %s869_s20  }
  0x1e   : > { %s1229_s1 = sld [smem:[#allocation19_spill]]  ;;  %s234_s13 = scalar_lea.vmem [#allocation5], %s972_s6 }
  0x1f   : > { %s1228_s8 = scalar_select %p979_p0, 1, 0 }
  0x20   : > { %s243_s14 = sshll.u32 %s234_s13, 4  ;;  %s995_s22 = scalar_lea.sflag [#allocation6], %s230_s9  ;;  %s992_s14 = int_to_ptr.vmem [resolvable:$true] %s243_s14 }
  0x21   : > { %p1001_p4 = pneg %p979_p0 }
  0x24   : > { %s988_s12 = scalar_lea.hbm %s1229_s1, %s975_s7  ;;  %s666_s11 = scalar_lea.hbm %s1229_s1, 256 }
  0x25   : > { %s661_s24 = scalar_lea.hbm %s988_s12, 128  ;;  %p667_p7 = scmp.lt.u32.totalorder %s988_s12, %s1229_s1 }
  0x26   : > { %p662_p3 = scmp.ne.s32.totalorder %s988_s12, %s661_s24  ;;  %p668_p10 = scmp.lt.u32.totalorder %s666_s11, %s661_s24 }
  0x27   : > { %p670_p12 = scmp.lt.u32.totalorder %s661_s24, %s988_s12 }
  0x28   : > { %p664_p5 = pnand %p1001_p4, %p662_p3  ;;  %p669_p13 = por %p668_p10, %p667_p7 }
  0x2a   : > { %p665_p6 = pneg %p664_p5  ;;  %p671_p1 = por %p670_p12, %p669_p13 }
  0x2c   : > { %p672_p2 = pnand %p671_p1, %p665_p6 }
  0x2e   : > { %675 = shalt.err (!%p672_p2)
}
  0x2f   : > { %s676_s9 = scalar_lea.vmem %s992_s14, 128  ;;  %s871_s26 = smov [#allocation5]  }
  0x30   : > { %p677_p3 = scmp.ne.s32.totalorder %s992_s14, %s676_s9  ;;  %s681_s10 = sshll.u32 %s871_s26, 4  ;;  %s682_s10 = int_to_ptr.vmem [resolvable:$false] %s681_s10 }
  0x31   : > { %s683_s5 = scalar_lea.vmem %s682_s10, 256  ;;  %p684_p9 = scmp.lt.s32.totalorder %s992_s14, %s682_s10 }
  0x32   : > { %p679_p5 = pnand %p677_p3, %p1001_p4  ;;  %p685_p8 = scmp.lt.s32.totalorder %s683_s5, %s676_s9 }
  0x34   : > { %p680_p11 = pneg %p679_p5  ;;  %p686_p7 = por %p685_p8, %p684_p9 }
  0x36   : > { %p687_p10 = pnand %p686_p7, %p680_p11 }
  0x38   : > { %690 = shalt.err (!%p687_p10)
}
  0x39   : > { %599 = dma.hbm_to_vmem [thread:$0]  (!%p979_p0), %s988_s12, 128, %s992_s14, %s995_s22  }
  0x3a   : > { %p1231_p12 = scmp.lt.s32.totalorder %s869_s20, 3  ;;  %p1232_p1 = scmp.ge.s32.totalorder %s869_s20, 1 }
  0x3b   : > { %s1037_s9 = scalar_lea.hbm %s1206_s0, %s975_s7  ;;  %s214_s26 = scalar_lea.vmem [#allocation2], %s972_s6 }
  0x3c   : > { %p1029_p2 = pnand %p1232_p1, %p1231_p12  ;;  %s223_s10 = sshll.u32 %s214_s26, 4  ;;  %s1040_s10 = int_to_ptr.vmem [resolvable:$true] %s223_s10 }
  0x3d   : > { %s1046_s5 = scalar_lea.hbm %s1208_s2, %s975_s7  ;;  %s1234_s1 = sand.u32 1, %s857_s17  }
  0x3e   : > { %s1233_s24 = scalar_select %p1029_p2, 1, 0 }
  0x3f   : > { %s211_s23 = scalar_lea.sflag [#allocation3], %s1234_s1  ;;  %s691_s19 = scalar_lea.hbm %s1037_s9, 128 }
  0x40   : > { %p692_p8 = scmp.ne.s32.totalorder %s1037_s9, %s691_s19  ;;  %s696_s29 = scalar_lea.hbm %s1206_s0, 256 }
  0x41   : > { %p697_p6 = scmp.lt.u32.totalorder %s1037_s9, %s1206_s0  ;;  %p698_p13 = scmp.lt.u32.totalorder %s696_s29, %s691_s19 }
  0x42   : > { %p694_p9 = pnand %p692_p8, %p1001_p4  ;;  %p700_p5 = scmp.lt.u32.totalorder %s691_s19, %s1037_s9 }
  0x43   : > { %p699_p3 = por %p698_p13, %p697_p6 }
  0x44   : > { %p695_p11 = pneg %p694_p9 }
  0x45   : > { %p701_p7 = por %p700_p5, %p699_p3 }
  0x47   : > { %p702_p10 = pnand %p701_p7, %p695_p11 }
  0x49   : > { %705 = shalt.err (!%p702_p10)
}
  0x4a   : > { %s706_s1 = scalar_lea.vmem %s1040_s10, 128  ;;  %s872_s7 = smov [#allocation2]  }
  0x4b   : > { %p707_p12 = scmp.ne.s32.totalorder %s1040_s10, %s706_s1  ;;  %s711_s12 = sshll.u32 %s872_s7, 4  ;;  %s712_s12 = int_to_ptr.vmem [resolvable:$false] %s711_s12 }
  0x4c   : > { %s713_s20 = scalar_lea.vmem %s712_s12, 256  ;;  %p714_p9 = scmp.lt.s32.totalorder %s1040_s10, %s712_s12 }
  0x4d   : > { %p709_p1 = pnand %p707_p12, %p1001_p4  ;;  %p715_p2 = scmp.lt.s32.totalorder %s713_s20, %s706_s1 }
  0x4f   : > { %p710_p8 = pneg %p709_p1  ;;  %p716_p6 = por %p715_p2, %p714_p9 }
  0x51   : > { %p717_p13 = pnand %p716_p6, %p710_p8 }
  0x53   : > { %720 = shalt.err (!%p717_p13)
}
  0x54   : > { %596 = dma.hbm_to_vmem [thread:$0]  (!%p979_p0), %s1037_s9, 128, %s1040_s10, %s211_s23  }
  0x55   : > { %s254_s19 = scalar_lea.vmem [#allocation7], %s972_s6  ;;  %s721_s14 = scalar_lea.hbm %s1046_s5, 128 }
  0x56   : > { %s263_s29 = sshll.u32 %s254_s19, 4  ;;  %p722_p11 = scmp.ne.s32.totalorder %s1046_s5, %s721_s14  ;;  %s264_s29 = int_to_ptr.vmem [resolvable:$true] %s263_s29 }
  0x57   : > { %s726_s26 = scalar_lea.hbm %s1208_s2, 256  ;;  %p727_p5 = scmp.lt.u32.totalorder %s1046_s5, %s1208_s2 }
  0x58   : > { %p724_p2 = pnand %p722_p11, %p1001_p4  ;;  %p728_p7 = scmp.lt.u32.totalorder %s726_s26, %s721_s14 }
  0x59   : > { %p730_p12 = scmp.lt.u32.totalorder %s721_s14, %s1046_s5 }
  0x5a   : > { %p725_p3 = pneg %p724_p2  ;;  %p729_p10 = por %p728_p7, %p727_p5 }
  0x5c   : > { %p731_p1 = por %p730_p12, %p729_p10 }
  0x5e   : > { %p732_p8 = pnand %p731_p1, %p725_p3 }
  0x60   : > { %735 = shalt.err (!%p732_p8)
}
  0x61   : > { %s736_s23 = scalar_lea.vmem %s264_s29, 128  ;;  %s873_s6 = smov [#allocation7]  }
  0x62   : > { %p737_p9 = scmp.ne.s32.totalorder %s264_s29, %s736_s23  ;;  %s741_s9 = sshll.u32 %s873_s6, 4  ;;  %s742_s9 = int_to_ptr.vmem [resolvable:$false] %s741_s9 }
  0x63   : > { %s743_s10 = scalar_lea.vmem %s742_s9, 256  ;;  %p744_p11 = scmp.lt.s32.totalorder %s264_s29, %s742_s9 }
  0x64   : > { %p739_p6 = pnand %p737_p9, %p1001_p4  ;;  %p745_p2 = scmp.lt.s32.totalorder %s743_s10, %s736_s23 }
  0x66   : > { %p740_p13 = pneg %p739_p6  ;;  %p746_p0 = por %p745_p2, %p744_p11 }
  0x68   : > { %p747_p5 = pnand %p746_p0, %p740_p13 }
  0x6a   : > { %750 = shalt.err (!%p747_p5)
}
  0x6b   : > { %p1235_p7 = scmp.ne.s32.totalorder %s1228_s8, 0  ;;  %p1236_p3 = scmp.ne.s32.totalorder %s1233_s24, 0 }
  0x6c   : > { %s1093_s25 = sand.u32 (!%p1236_p3), 1, %s853_s16   ;;  %p1237_p0 = scmp.ne.s32.totalorder (!%p1236_p3), %s1224_s27, 0 }
  0x6d   : > { %602 = dma.hbm_to_vmem [thread:$0]  (!%p1235_p7), %s1046_s5, 128, %s264_s29, %s995_s22  }
  0x6e   : > { %272 = sbr.rel (%p1236_p3) target bundleno = 171 (0xab), region = 32  ;;  %s1096_s12 = sshll.u32 (!%p1236_p3), %s1093_s25, 3 }
  0x6f   : > { %s275_s20 = scalar_lea.sflag (!%p1236_p3), [#allocation3], %s1093_s25  ;;  %s278_s19 = scalar_lea.vmem (!%p1236_p3), [#allocation2], %s1096_s12 }
  0x75   : > { %832 = dma.done.wait (%p1237_p0), %s275_s20, 128  }
  0x76   : > { %834 = vsyncadd (%p1237_p0), %s275_s20, 4294967168  ;;  %s283_s8 = sand.u32 1, %s932_s21   ;;  %s287_s24 = scalar_lea.vmem [#allocation5], %s1096_s12 }
  0x77   : > { %s284_s22 = scalar_lea.sflag [#allocation6], %s283_s8 }
  0x78   : > { %836 = dma.done.wait (%p1237_p0), %s284_s22, 256  }
  0x79   : > { %838 = vsyncadd (%p1237_p0), %s284_s22, 4294967040  ;;  %s579_s5 = sshll.u32 %s861_s18, 7  ;;  %s335_s29 = scalar_lea.vmem [#allocation9], %s1096_s12  ;;  %v345_v0 = vld [vmem:[%s278_s19] sm:$0xff]  ;;  %v346_v1 = vld [vmem:[%s287_s24] sm:$0xff] }
  0x7a   : > { %s395_s14 = sshll.u32 %s335_s29, 4  ;;  %s296_s21 = scalar_lea.vmem [#allocation7], %s1096_s12  ;;  %v348_v3 = vsub.f32 %v345_v0, %v346_v1  ;;  %s1120_s14 = int_to_ptr.vmem [resolvable:$true] %s395_s14 }
  0x7b   : > { %v347_v2 = vld [vmem:[%s296_s21] sm:$0xff]  ;;  %s1118_s13 = scalar_lea.hbm %s1210_s4, %s579_s5  ;;  %s328_s26 = scalar_lea.vmem [#allocation8], %s1096_s12 }
  0x7c   : > { %v349_v4 = vand.u32 2147483647, %v348_v3  ;;  %358 = vst [vmem:[%s335_s29] sm:$0xff] %v347_v2  ;;  %s1125_s1 = sshll.u32 %s328_s26, 4  ;;  %s365_s7 = scalar_lea.sflag [#allocation10], %s1093_s25  ;;  %s1157_s1 = int_to_ptr.vmem [resolvable:$true] %s1125_s1 }
  0x7d   : > { %s751_s23 = scalar_lea.vmem %s1120_s14, 128  ;;  %p1238_p10 = scmp.ne.s32.totalorder %s1225_s28, 0 }
  0x7e   : > { %p752_p4 = scmp.ne.s32.totalorder %s1120_s14, %s751_s23  ;;  %s874_s6 = smov [#allocation9]  }
  0x7f   : > { %s755_s9 = sshll.u32 %s874_s6, 4  ;;  %s756_s9 = int_to_ptr.vmem [resolvable:$false] %s755_s9 }
  0x80   : > { %p753_p12 = pnand %p752_p4, %p1238_p10  ;;  %s757_s10 = scalar_lea.vmem %s756_s9, 256 }
  0x81   : > { %p758_p8 = scmp.lt.s32.totalorder %s1120_s14, %s756_s9  ;;  %p759_p9 = scmp.lt.s32.totalorder %s757_s10, %s751_s23 }
  0x82   : > { %p754_p1 = pneg %p753_p12 }
  0x83   : > { %p760_p6 = por %p759_p9, %p758_p8 }
  0x85   : > { %p761_p13 = pnand %p760_p6, %p754_p1 }
  0x87   : > { %764 = shalt.err (!%p761_p13)
}
  0x88   : > { %s765_s20 = scalar_lea.hbm %s1118_s13, 128  ;;  %s769_s22 = scalar_lea.hbm %s1210_s4, 256 }
  0x89   : > { %p766_p11 = scmp.ne.s32.totalorder %s1118_s13, %s765_s20  ;;  %p770_p7 = scmp.lt.u32.totalorder %s1118_s13, %s1210_s4 }
  0x8a   : > { %p771_p3 = scmp.lt.u32.totalorder %s769_s22, %s765_s20  ;;  %p773_p4 = scmp.lt.u32.totalorder %s765_s20, %s1118_s13 }
  0x8b   : > { %p767_p2 = pnand %p766_p11, %p1238_p10 }
  0x8c   : > { %p772_p0 = por %p771_p3, %p770_p7 }
  0x8d   : > { %p768_p5 = pneg %p767_p2 }
  0x8e   : > { %p774_p12 = por %p773_p4, %p772_p0 }
  0x90   : > { %p775_p1 = pnand %p774_p12, %p768_p5 }
  0x92   : > { %778 = shalt.err (!%p775_p1)
}
  0x93   : > { %590 = dma.vmem_to_hbm [thread:$0]  (%p1238_p10), %s1120_s14, 128, %s1118_s13, %s365_s7   ;;  %v350_v5 = vmul.f32 %v349_v4, %v347_v2 }
  0x94   : > { %s1154_s27 = scalar_lea.hbm %s1209_s3, %s579_s5  ;;  %s360_s23 = scalar_lea.sflag [#allocation4], %s1093_s25 }
  0x95   : > { %354 = vst [vmem:[%s328_s26] sm:$0xff] %v350_v5  ;;  %s779_s6 = scalar_lea.vmem %s1157_s1, 128  ;;  %s875_s14 = smov [#allocation8]  }
  0x96   : > { %p780_p8 = scmp.ne.s32.totalorder %s1157_s1, %s779_s6  ;;  %s783_s18 = sshll.u32 %s875_s14, 4  ;;  %s784_s18 = int_to_ptr.vmem [resolvable:$false] %s783_s18 }
  0x97   : > { %s785_s13 = scalar_lea.vmem %s784_s18, 256  ;;  %p786_p13 = scmp.lt.s32.totalorder %s1157_s1, %s784_s18 }
  0x98   : > { %p781_p9 = pnand %p780_p8, %p1238_p10  ;;  %p787_p11 = scmp.lt.s32.totalorder %s785_s13, %s779_s6 }
  0x9a   : > { %p782_p6 = pneg %p781_p9  ;;  %p788_p2 = por %p787_p11, %p786_p13 }
  0x9c   : > { %p789_p5 = pnand %p788_p2, %p782_p6 }
  0x9e   : > { %792 = shalt.err (!%p789_p5)
}
  0x9f   : > { %s793_s25 = scalar_lea.hbm %s1154_s27, 128  ;;  %s797_s26 = scalar_lea.hbm %s1209_s3, 256 }
  0xa0   : > { %p794_p7 = scmp.ne.s32.totalorder %s1154_s27, %s793_s25  ;;  %p798_p4 = scmp.lt.u32.totalorder %s1154_s27, %s1209_s3 }
  0xa1   : > { %p799_p12 = scmp.lt.u32.totalorder %s797_s26, %s793_s25  ;;  %p801_p8 = scmp.lt.u32.totalorder %s793_s25, %s1154_s27 }
  0xa2   : > { %p795_p3 = pnand %p794_p7, %p1238_p10 }
  0xa3   : > { %p800_p1 = por %p799_p12, %p798_p4 }
  0xa4   : > { %p796_p0 = pneg %p795_p3 }
  0xa5   : > { %p802_p9 = por %p801_p8, %p800_p1 }
  0xa7   : > { %p803_p6 = pnand %p802_p9, %p796_p0 }
  0xa9   : > { %806 = shalt.err (!%p803_p6)
}
  0xaa   : > { %589 = dma.vmem_to_hbm [thread:$0]  (%p1238_p10), %s1157_s1, 128, %s1154_s27, %s360_s23  }
  0xab PF: > { %s1239_s10 = sld [smem:[#allocation16_spill]]  ;;  %s407_s20 = sand.u32 1, %s849_s15  }
  0xac   : > { %p1240_p13 = scmp.ne.s32.totalorder %s1227_s30, 0  ;;  %s408_s19 = scalar_lea.sflag [#allocation4], %s407_s20 }
  0xb1   : > { %p1241_p11 = scmp.ge.s32.totalorder %s1239_s10, 2 }
  0xb3   : > { %p604_p2 = pnand %p1241_p11, %p1240_p13 }
  0xb5   : > { %840 = dma.done.wait (!%p604_p2), %s408_s19, 128  }
  0xb6   : > { %842 = vsyncadd (!%p604_p2), %s408_s19, 4294967168  ;;  %s417_s8 = scalar_lea.sflag [#allocation10], %s407_s20 }
  0xb7   : > { %844 = dma.done.wait (!%p604_p2), %s417_s8, 128  }
  0xb8   : > { %846 = vsyncadd (!%p604_p2), %s417_s8, 4294967168  ;;  %s27_s20 = sadd.s32 1, %s1239_s10   ;;  %s1242_s28 = sld [smem:[#allocation18_spill]] }
  0xb9   : > { %p24_p5 = scmp.ge.s32.totalorder %s27_s20, 4   ;;  %s1243_s18 = sld [smem:[#allocation15_spill]] }
  0xba   : > { %s1244_s19 = sld [smem:[#allocation17_spill]]  ;;  %s1245_s15 = smov %s853_s16 }
  0xbb   : > { %s1246_s16 = smov %s857_s17  ;;  %26 = sbr.rel (!%p24_p5) target bundleno = 12 (0xc), region = 122 }
  0xbe   : > { %s1247_s17 = smov %s1242_s28 }
  0xc2   :  { %422 = vsyncpa [#allocation3], 1 }
  0xc3   :  { %424 = vsyncpa [#allocation3 + $0x1], 1 }
  0xc4   :  { %425 = vsyncpa [#allocation6], 1 }
  0xc5   :  { %427 = vsyncpa [#allocation6 + $0x1], 1 }
  0xc6   :  { %428 = vsyncpa [#allocation4], 1 }
  0xc7   :  { %430 = vsyncpa [#allocation4 + $0x1], 1 }
  0xc8   :  { %431 = vsyncpa [#allocation10], 1 }
  0xc9   :  { %433 = vsyncpa [#allocation10 + $0x1], 1 }

</bundles_post_ra>
